<compile_context>
chip_gen: v7x
topology: tpu7x:2x2x1
jax: 0.10.0
libtpu: 0.0.40
codegen_flags: <defaults>
</compile_context>

<pallas_src>
import functools

import jax
import jax.numpy as jnp
from jax.experimental import pallas as pl
from jax.experimental.pallas import tpu as pltpu

_EPS = 1e-5  # PyTorch F.layer_norm default eps

# Conservative per-step VMEM budget: fits v7x's 64 MiB physical VMEM with
# headroom; v5e/v6e (128 MiB physical) are comfortably within this too.
_VMEM_BUDGET_BYTES = 40 * 1024 * 1024
_VMEM_LIMIT_BYTES = 64 * 1024 * 1024
_MAX_TILE_ROWS = 1024


def _choose_tile_rows(rows, dim, in_itemsize):
    """Pick the largest row tile that keeps the pipelined VMEM footprint small."""
    # Sublane packing factor: 4B -> 8, 2B -> 16, 1B -> 32.
    pack = max(8, 32 // max(1, in_itemsize))
    # Per-row VMEM cost estimate:
    #   2x input tile (double buffered) + 2x output tile (double buffered)
    #   + ~3 f32 temporaries (x, xc, y staging copies inside the body).
    bytes_per_row = dim * (4 * in_itemsize + 3 * 4)
    tr = _VMEM_BUDGET_BYTES // max(1, bytes_per_row)
    tr = min(tr, rows, _MAX_TILE_ROWS)
    tr = (tr // pack) * pack
    return max(pack, tr)


def _layernorm_kernel(x_ref, g_ref, b_ref, o_ref):
    # x_ref: (tile_rows, dim); g_ref/b_ref: (1, dim) float32 (VMEM-resident,
    # same block every grid step).
    x = x_ref[...].astype(jnp.float32)
    mean = jnp.mean(x, axis=-1, keepdims=True)
    xc = x - mean
    # Two-pass (centered) variance: matches PyTorch numerics and avoids the
    # catastrophic-cancellation risk of the E[x^2]-mean^2 form.
    var = jnp.mean(xc * xc, axis=-1, keepdims=True)
    inv = jax.lax.rsqrt(var + _EPS)
    y = xc * inv * g_ref[...] + b_ref[...]
    o_ref[...] = y.astype(o_ref.dtype)


@jax.jit
def layer_norm(x, gamma, beta):
    """LayerNorm over the last dim of x (any leading shape); PyTorch semantics."""
    orig_shape = x.shape
    dim = orig_shape[-1]
    rows = 1
    for s in orig_shape[:-1]:
        rows *= s

    x2 = x.reshape(rows, dim)
    # Hoist parameter casts out of the kernel body: pass f32 params directly.
    g2 = gamma.astype(jnp.float32).reshape(1, dim)
    b2 = beta.astype(jnp.float32).reshape(1, dim)

    in_itemsize = jnp.dtype(x.dtype).itemsize
    tile_rows = _choose_tile_rows(rows, dim, in_itemsize)

    # Handle ragged row counts by padding to a multiple of tile_rows.
    num_tiles = pl.cdiv(rows, tile_rows)
    rows_padded = num_tiles * tile_rows
    if rows_padded != rows:
        x2 = jnp.pad(x2, ((0, rows_padded - rows), (0, 0)))

    cost = pl.CostEstimate(
        flops=10 * rows * dim,
        transcendentals=rows,
        bytes_accessed=2 * rows * dim * in_itemsize + 2 * dim * 4,
    )

    out = pl.pallas_call(
        _layernorm_kernel,
        out_shape=jax.ShapeDtypeStruct((rows_padded, dim), x.dtype),
        grid_spec=pltpu.PrefetchScalarGridSpec(
            num_scalar_prefetch=0,
            grid=(num_tiles,),
            in_specs=[
                pl.BlockSpec((tile_rows, dim), lambda i: (i, 0)),
                pl.BlockSpec((1, dim), lambda i: (0, 0)),
                pl.BlockSpec((1, dim), lambda i: (0, 0)),
            ],
            out_specs=pl.BlockSpec((tile_rows, dim), lambda i: (i, 0)),
        ),
        compiler_params=pltpu.CompilerParams(
            dimension_semantics=("parallel",),
            vmem_limit_bytes=_VMEM_LIMIT_BYTES,
        ),
        cost_estimate=cost,
    )(x2, g2, b2)

    if rows_padded != rows:
        out = out[:rows]
    return out.reshape(orig_shape)


def _reference_layer_norm(x, gamma, beta):
    xf = x.astype(jnp.float32)
    mean = jnp.mean(xf, axis=-1, keepdims=True)
    var = jnp.mean((xf - mean) ** 2, axis=-1, keepdims=True)
    y = (xf - mean) * jax.lax.rsqrt(var + _EPS) * gamma.astype(jnp.float32) + beta.astype(jnp.float32)
    return y.astype(x.dtype)


if __name__ == "__main__":
    key = jax.random.PRNGKey(0)
    batch, seq, hidden = 2, 8, 128

    x = jax.random.normal(key, (batch, seq, hidden), dtype=jnp.float32)

    # Deterministic parameter init mirroring the PyTorch module:
    #   gamma = ones(dim) (Parameter), beta = zeros(dim) (buffer)
    gamma = jnp.ones((hidden,), dtype=jnp.float32)
    beta = jnp.zeros((hidden,), dtype=jnp.float32)

    out = layer_norm(x, gamma, beta)
    out = jax.block_until_ready(out)

    ref = _reference_layer_norm(x, gamma, beta)
    assert out.shape == x.shape and out.dtype == x.dtype
    assert jnp.allclose(out, ref, atol=1e-5, rtol=1e-5)

    # Also exercise a ragged row count (not divisible by the chosen tile).
    x_odd = jax.random.normal(jax.random.PRNGKey(1), (3, 7, hidden), dtype=jnp.float32)
    out_odd = jax.block_until_ready(layer_norm(x_odd, gamma, beta))
    assert jnp.allclose(out_odd, _reference_layer_norm(x_odd, gamma, beta),
                        atol=1e-5, rtol=1e-5)

    print("KERNEL_OK")
</pallas_src>

<mosaic_0001>
module attributes {stable_mosaic.version = 11 : i64} {
  func.func @_layernorm_kernel(%arg0: i32, %arg1: memref<16x128xf32, #tpu.memory_space<vmem>>, %arg2: memref<1x128xf32, #tpu.memory_space<vmem>>, %arg3: memref<1x128xf32, #tpu.memory_space<vmem>>, %arg4: memref<16x128xf32, #tpu.memory_space<vmem>>) attributes {dimension_semantics = [#tpu.dimension_semantics<parallel>], iteration_bounds = array<i64: 1>, scalar_prefetch = 0 : i64, scratch_operands = 0 : i64, tpu.core_type = #tpu.core_type<tc>, window_params = [{transform_indices = @transform_0, window_bounds = array<i64: 16, 128>}, {pipeline_mode = #tpu.pipeline_mode<synchronous>, transform_indices = @transform_1, window_bounds = array<i64: 1, 128>}, {pipeline_mode = #tpu.pipeline_mode<synchronous>, transform_indices = @transform_2, window_bounds = array<i64: 1, 128>}, {transform_indices = @transform_3, window_bounds = array<i64: 16, 128>}]} {
    %c0 = arith.constant 0 : index
    %c0_0 = arith.constant 0 : index
    %0 = vector.load %arg1[%c0, %c0_0] : memref<16x128xf32, #tpu.memory_space<vmem>>, vector<16x128xf32>
    %cst = arith.constant dense<0.000000e+00> : vector<16xf32>
    %1 = vector.multi_reduction <add>, %0, %cst [1] : vector<16x128xf32> to vector<16xf32>
    %2 = vector.shape_cast %1 : vector<16xf32> to vector<16x1xf32>
    %cst_1 = arith.constant 1.280000e+02 : f32
    %3 = vector.broadcast %cst_1 : f32 to vector<16x1xf32>
    %4 = arith.divf %2, %3 : vector<16x1xf32>
    %5 = vector.broadcast %4 : vector<16x1xf32> to vector<16x128xf32>
    %6 = arith.subf %0, %5 : vector<16x128xf32>
    %7 = arith.mulf %6, %6 : vector<16x128xf32>
    %cst_2 = arith.constant dense<0.000000e+00> : vector<16xf32>
    %8 = vector.multi_reduction <add>, %7, %cst_2 [1] : vector<16x128xf32> to vector<16xf32>
    %9 = vector.shape_cast %8 : vector<16xf32> to vector<16x1xf32>
    %cst_3 = arith.constant 1.280000e+02 : f32
    %10 = vector.broadcast %cst_3 : f32 to vector<16x1xf32>
    %11 = arith.divf %9, %10 : vector<16x1xf32>
    %cst_4 = arith.constant 9.99999974E-6 : f32
    %12 = vector.broadcast %cst_4 : f32 to vector<16x1xf32>
    %13 = arith.addf %11, %12 : vector<16x1xf32>
    %14 = math.rsqrt %13 : vector<16x1xf32>
    %15 = vector.broadcast %14 : vector<16x1xf32> to vector<16x128xf32>
    %16 = arith.mulf %6, %15 : vector<16x128xf32>
    %c0_5 = arith.constant 0 : index
    %c0_6 = arith.constant 0 : index
    %17 = vector.load %arg2[%c0_5, %c0_6] : memref<1x128xf32, #tpu.memory_space<vmem>>, vector<1x128xf32>
    %18 = vector.broadcast %17 : vector<1x128xf32> to vector<16x128xf32>
    %19 = arith.mulf %16, %18 : vector<16x128xf32>
    %c0_7 = arith.constant 0 : index
    %c0_8 = arith.constant 0 : index
    %20 = vector.load %arg3[%c0_7, %c0_8] : memref<1x128xf32, #tpu.memory_space<vmem>>, vector<1x128xf32>
    %21 = vector.broadcast %20 : vector<1x128xf32> to vector<16x128xf32>
    %22 = arith.addf %19, %21 : vector<16x128xf32>
    %c0_9 = arith.constant 0 : index
    %c0_10 = arith.constant 0 : index
    %23 = vector.load %arg4[%c0_9, %c0_10] : memref<16x128xf32, #tpu.memory_space<vmem>>, vector<16x128xf32>
    tpu.vector_store %arg4[%c0_9, %c0_10], %22 {strides = array<i32>} : memref<16x128xf32, #tpu.memory_space<vmem>>, vector<16x128xf32>,
    return
  }
  func.func @transform_0(%arg0: i32) -> (i32, i32) {
    %c0_i32 = arith.constant 0 : i32
    %c0_i32_0 = arith.constant 0 : i32
    return %arg0, %c0_i32 : i32, i32
  }
  func.func @transform_1(%arg0: i32) -> (i32, i32) {
    %c0_i32 = arith.constant 0 : i32
    %c0_i32_0 = arith.constant 0 : i32
    %c0_i32_1 = arith.constant 0 : i32
    return %c0_i32, %c0_i32_0 : i32, i32
  }
  func.func @transform_2(%arg0: i32) -> (i32, i32) {
    %c0_i32 = arith.constant 0 : i32
    %c0_i32_0 = arith.constant 0 : i32
    %c0_i32_1 = arith.constant 0 : i32
    return %c0_i32, %c0_i32_0 : i32, i32
  }
  func.func @transform_3(%arg0: i32) -> (i32, i32) {
    %c0_i32 = arith.constant 0 : i32
    %c0_i32_0 = arith.constant 0 : i32
    return %arg0, %c0_i32 : i32, i32
  }
}

</mosaic_0001>

<bundles_post_ra>
// kernel: layer_norm.1
= control target key start
LH: loop header
LB: loop body
LE: loop exit
PB: predicated region body
PF: predicated region fallthrough
CT: control target
= control target key end

     0   :  { %8 = vsyncpa [#allocation3], 0  ;;  %s308_s0 = inlined_call_operand.hbm [shape: f32[16,128], index: 0, kind: input, shape index: {}]   ;;  %s309_s1 = inlined_call_operand.hbm [shape: f32[1,128], index: 1, kind: input, shape index: {}]   ;;  %s310_s2 = inlined_call_operand.hbm [shape: f32[1,128], index: 2, kind: input, shape index: {}]   ;;  %s311_s3 = inlined_call_operand.hbm [shape: f32[16,128], index: 3, kind: output, shape index: {}]  }
   0x1   :  { %9 = vsyncpa [#allocation6], 0 }
   0x2   :  { %10 = vsyncpa [#allocation4], 0  ;;  %s221_s12 = smov [#allocation5]   ;;  %s222_s14 = smov [#allocation2]  }
   0x3   :  { %s29_s13 = sshll.u32 %s221_s12, 4  ;;  %s16_s15 = sshll.u32 %s222_s14, 4  ;;  %s30_s13 = int_to_ptr.vmem [resolvable:$true] %s29_s13  ;;  %s247_s15 = int_to_ptr.vmem [resolvable:$true] %s16_s15 }
   0x4   :  { %s127_s18 = scalar_lea.hbm %s309_s1, 16 }
   0x5   :  { %p128_p0 = scmp.ne.s32.totalorder %s309_s1, %s127_s18  ;;  %p131_p1 = scmp.lt.u32.totalorder %s127_s18, %s309_s1 }
   0x7   :  { %p133_p2 = pnand %p131_p1, %p128_p0 }
   0x9   :  { %136 = shalt.err (!%p133_p2)
}
   0xa   :  { %s137_s23 = scalar_lea.vmem %s30_s13, 16  ;;  %s141_s24 = scalar_lea.vmem %s30_s13, 32 }
   0xb   :  { %p138_p3 = scmp.ne.s32.totalorder %s30_s13, %s137_s23  ;;  %p142_p4 = scmp.lt.s32.totalorder %s30_s13, %s30_s13 }
   0xc   :  { %p143_p5 = scmp.lt.s32.totalorder %s141_s24, %s137_s23 }
   0xe   :  { %p144_p6 = por %p143_p5, %p142_p4 }
  0x10   :  { %p145_p7 = pnand %p144_p6, %p138_p3 }
  0x12   :  { %148 = shalt.err (!%p145_p7)
}
  0x13   :  { %32 = dma.hbm_to_vmem [thread:$0]  %s309_s1, 16, %s30_s13, [#allocation6]  }
  0x14   :  { %s149_s29 = scalar_lea.hbm %s308_s0, 256 }
  0x15   :  { %p150_p8 = scmp.ne.s32.totalorder %s308_s0, %s149_s29  ;;  %p153_p9 = scmp.lt.u32.totalorder %s149_s29, %s308_s0 }
  0x17   :  { %p155_p10 = pnand %p153_p9, %p150_p8 }
  0x19   :  { %158 = shalt.err (!%p155_p10)
}
  0x1a   :  { %s159_s7 = scalar_lea.vmem %s247_s15, 256  ;;  %p164_p12 = scmp.lt.s32.totalorder %s247_s15, %s247_s15 }
  0x1b   :  { %p160_p11 = scmp.ne.s32.totalorder %s247_s15, %s159_s7  ;;  %p165_p13 = scmp.lt.s32.totalorder %s159_s7, %s159_s7 }
  0x1d   :  { %p166_p0 = por %p165_p13, %p164_p12 }
  0x1f   :  { %p167_p1 = pnand %p166_p0, %p160_p11 }
  0x21   :  { %170 = shalt.err (!%p167_p1)
}
  0x22   :  { %s223_s1 = smov 128   ;;  %s224_s8 = smov 8  }
  0x23   :  { %22 = dma.hbm_to_vmem [thread:$0]  %s308_s0, 256, %s247_s15, [#allocation3], %s223_s1, %s223_s1, %s224_s8  }
  0x24   :  { %s225_s11 = smov [#allocation7]   ;;  %s171_s16 = scalar_lea.hbm %s310_s2, 16 }
  0x25   :  { %s39_s12 = sshll.u32 %s225_s11, 4  ;;  %p172_p2 = scmp.ne.s32.totalorder %s310_s2, %s171_s16  ;;  %s40_s12 = int_to_ptr.vmem [resolvable:$true] %s39_s12 }
  0x26   :  { %p175_p3 = scmp.lt.u32.totalorder %s171_s16, %s310_s2 }
  0x28   :  { %p177_p4 = pnand %p175_p3, %p172_p2 }
  0x2a   :  { %180 = shalt.err (!%p177_p4)
}
  0x2b   :  { %s181_s21 = scalar_lea.vmem %s40_s12, 16  ;;  %s185_s0 = scalar_lea.vmem %s40_s12, 32 }
  0x2c   :  { %p182_p5 = scmp.ne.s32.totalorder %s40_s12, %s181_s21  ;;  %p186_p6 = scmp.lt.s32.totalorder %s40_s12, %s40_s12 }
  0x2d   :  { %p187_p7 = scmp.lt.s32.totalorder %s185_s0, %s181_s21 }
  0x2f   :  { %p188_p8 = por %p187_p7, %p186_p6 }
  0x31   :  { %p189_p9 = pnand %p188_p8, %p182_p5 }
  0x33   :  { %192 = shalt.err (!%p189_p9)
}
  0x34   :  { %42 = dma.hbm_to_vmem [thread:$0]  %s310_s2, 16, %s40_s12, [#allocation6]  }
  0x35   :  { %215 = dma.done.wait [#allocation3], 256  }
  0x36   :  { %216 = vsyncadd [#allocation3], 4294967040 }
  0x37   :  { %217 = dma.done.wait [#allocation6], 32  }
  0x38   :  { %218 = vsyncadd [#allocation6], 4294967264  ;;  %v52_v0 = vld [vmem:[#allocation2] sm:$0xff]  ;;  %v53_v1 = vld [vmem:[#allocation2 + $0x8] sm:$0xff]  ;;  %s226_s2 = smov [#allocation8]  }
  0x39   :  { %54 = vadd.xlane.f32.xlu0 %v52_v0  ;;  %v115_v17 = vld [vmem:[#allocation5] ss:$0 sm:$0xff]  ;;  %v116_v19 = vld [vmem:[#allocation7] ss:$0 sm:$0xff]  ;;  %s102_s23 = sshll.u32 %s226_s2, 4  ;;  %s103_s23 = int_to_ptr.vmem [resolvable:$true] %s102_s23 }
  0x3a   :  { %s193_s24 = scalar_lea.vmem %s103_s23, 256  ;;  %p198_p11 = scmp.lt.s32.totalorder %s103_s23, %s103_s23 }
  0x3b   :  { %p194_p10 = scmp.ne.s32.totalorder %s103_s23, %s193_s24  ;;  %p199_p12 = scmp.lt.s32.totalorder %s193_s24, %s193_s24 }
  0x3d   :  { %56 = vadd.xlane.f32.xlu0 %v53_v1  ;;  %p200_p13 = por %p199_p12, %p198_p11 }
  0x3f   :  { %p201_p0 = pnand %p200_p13, %p194_p10 }
  0xc6   :  { %v55_v2 = vpop.xlane.xlu0 %54 }
  0xc7   :  { %v59_v3 = vmul.f32 0.0078125, %v55_v2 }
  0xc9   :  { %v61_v4 = vsub.f32 %v52_v0, %v59_v3 }
  0xca   :  { %v57_v5 = vpop.xlane.xlu0 %56 }
  0xcb   :  { %v60_v6 = vmul.f32 0.0078125, %v57_v5  ;;  %v63_v7 = vmul.f32 %v61_v4, %v61_v4 }
  0xcd   :  { %v62_v8 = vsub.f32 %v53_v1, %v60_v6  ;;  %65 = vadd.xlane.f32.xlu1 %v63_v7 }
  0xcf   :  { %v64_v9 = vmul.f32 %v62_v8, %v62_v8 }
  0xd1   :  { %67 = vadd.xlane.f32.xlu1 %v64_v9 }
 0x15a   :  { %v66_v10 = vpop.xlane.xlu1 %65 }
 0x15b   :  { %v69_v11 = vmul.f32 0.0078125, %v66_v10 }
 0x15d   :  { %v71_v12 = vadd.f32 1e-05, %v69_v11 }
 0x15e   :  { %v68_v13 = vpop.xlane.xlu1 %67 }
 0x15f   :  { %123 = vrsqrt.f32 %v71_v12  ;;  %v70_v14 = vmul.f32 0.0078125, %v68_v13 }
 0x161   :  { %v72_v15 = vadd.f32 1e-05, %v70_v14 }
 0x163   :  { %125 = vrsqrt.f32 %v72_v15 }
 0x169   :  { %v124_v16 = vpop.eup %123 }
 0x16a   :  { %v75_v18 = vmul.f32 %v124_v16, %v61_v4 }
 0x16c   :  { %v84_v20 = vmul.f32 %v115_v17, %v75_v18 }
 0x16d   :  { %v126_v21 = vpop.eup %125 }
 0x16e   :  { %v76_v22 = vmul.f32 %v126_v21, %v62_v8  ;;  %v93_v23 = vadd.f32 %v116_v19, %v84_v20 }
 0x170   :  { %v85_v24 = vmul.f32 %v115_v17, %v76_v22  ;;  %95 = vst [vmem:[#allocation8] sm:$0xff] %v93_v23 }
 0x172   :  { %v94_v25 = vadd.f32 %v116_v19, %v85_v24 }
 0x174   :  { %96 = vst [vmem:[#allocation8 + $0x8] sm:$0xff] %v94_v25 }
 0x175   :  { %204 = shalt.err (!%p201_p0)
}
 0x176   :  { %s205_s27 = scalar_lea.hbm %s311_s3, 256 }
 0x177   :  { %p206_p1 = scmp.ne.s32.totalorder %s311_s3, %s205_s27  ;;  %p209_p2 = scmp.lt.u32.totalorder %s205_s27, %s311_s3 }
 0x179   :  { %p211_p3 = pnand %p209_p2, %p206_p1 }
 0x17b   :  { %214 = shalt.err (!%p211_p3)
}
 0x17c   :  { %108 = dma.vmem_to_hbm [thread:$0]  %s103_s23, 256, %s311_s3, [#allocation4], %s223_s1, %s223_s1, %s224_s8  }
 0x17d   :  { %219 = dma.done.wait [#allocation4], 256  }
 0x17e   :  { %220 = vsyncadd [#allocation4], 4294967040 }
 0x17f   :  { %112 = vsyncpa [#allocation3], 1 }
 0x180   :  { %113 = vsyncpa [#allocation6], 1 }
 0x181   :  { %114 = vsyncpa [#allocation4], 1 }

</bundles_post_ra>
